<compile_context>
chip_gen: v7x
topology: tpu7x:2x2x1
jax: 0.10.0
libtpu: 0.0.40
codegen_flags: <defaults>
</compile_context>

<pallas_src>
import jax
import jax.numpy as jnp
from jax.experimental import pallas as pl
from jax.experimental.pallas import tpu as pltpu

# TODO(synk): the annotated-transformer LayerNorm uses eps=1e-6; PyTorch's
# nn.LayerNorm default is 1e-5 — match the eps of the actual module replaced.
EPS = 1e-6


# --------------------------------------------------------------------------
# Kernels
# --------------------------------------------------------------------------
def _kernel_fused(x_ref, w_ref, b_ref, o_ref):
    """Single-column-tile path: LN + matmul + bias + residual, one grid axis."""
    # x_ref: (TR, H)   w_ref: (H, H) bf16 (gamma folded)   b_ref: (1, H) f32
    x = x_ref[...].astype(jnp.float32)

    # LayerNorm over the hidden (lane) axis, f32. gamma/beta folded into W/b.
    mean = jnp.mean(x, axis=-1, keepdims=True)
    c = x - mean
    var = jnp.mean(c * c, axis=-1, keepdims=True)
    c = c * jax.lax.rsqrt(var + EPS)          # reuse `c` in place (liveness)
    del x                                     # don't keep x live across the MXU

    # Sublayer Linear on the MXU: bf16 in, f32 accumulation.
    y = jnp.dot(c.astype(jnp.bfloat16), w_ref[...],
                preferred_element_type=jnp.float32)
    y = y + b_ref[...]                        # = beta @ W + b

    # TODO(synk): dropout is identity (eval mode); training-mode dropout would
    # build a mask with pltpu.prng_seed / pltpu.prng_random_bits.

    # Residual: re-read x from VMEM (cheap) instead of keeping it live.
    o_ref[...] = (x_ref[...].astype(jnp.float32) + y).astype(o_ref.dtype)


def _kernel_colsplit(x_full_ref, x_col_ref, w_ref, b_ref, o_ref, ln_ref):
    """Column-split path for large H: grid (rows i [parallel], cols j [inner]).

    LayerNorm is computed once per row tile (at j == 0) into VMEM scratch and
    reused for every column tile of the weight.
    """
    @pl.when(pl.program_id(1) == 0)
    def _():
        x = x_full_ref[...].astype(jnp.float32)
        mean = jnp.mean(x, axis=-1, keepdims=True)
        c = x - mean
        var = jnp.mean(c * c, axis=-1, keepdims=True)
        ln_ref[...] = (c * jax.lax.rsqrt(var + EPS)).astype(jnp.bfloat16)

    y = jnp.dot(ln_ref[...], w_ref[...], preferred_element_type=jnp.float32)
    y = y + b_ref[...]
    o_ref[...] = (x_col_ref[...].astype(jnp.float32) + y).astype(o_ref.dtype)


# --------------------------------------------------------------------------
# Parameter prep (run ONCE per weight, not per forward call)
# --------------------------------------------------------------------------
def prepare_sublayer_params(gamma, beta, w, b):
    """Fold LayerNorm affine params into the linear layer.

    y = (LN_affine(x)) @ W + b
      = ((x - mu) * inv_std * gamma + beta) @ W + b
      = ((x - mu) * inv_std) @ (diag(gamma) @ W) + (beta @ W + b)

    Returns (w_folded_bf16, b_fused_f32).
    NOTE: the in-kernel matmul is `normed @ W`; PyTorch nn.Linear stores its
    weight as (out, in) and computes x @ W.T — transpose real weights here.
    """
    w_f32 = w.astype(jnp.float32)
    gamma_f32 = gamma.astype(jnp.float32)
    w_folded = (gamma_f32[:, None] * w_f32).astype(jnp.bfloat16)
    b_fused = beta.astype(jnp.float32) @ w_f32 + b.astype(jnp.float32)
    return w_folded, b_fused


# --------------------------------------------------------------------------
# Tiling / VMEM heuristics
# --------------------------------------------------------------------------
def _auto_tile_rows(rows, hidden, itemsize, target_bytes=2 * 1024 * 1024):
    # ~1-4 MiB x tile amortizes per-grid-step overhead (~0.35 us) and keeps
    # DMAs in the large-transfer regime (HBM-bound at small/medium H).
    t = max(256, (target_bytes // (hidden * itemsize)) // 256 * 256)
    if rows <= t:
        return rows          # single block equal to the full row extent
    return t


def _choose_tn(hidden):
    # Only split the weight columns when the resident (H, H) bf16 weight gets
    # large for VMEM (v7x: 64 MiB/TC). tn multiple of 256 keeps v6e/v7x MXU
    # pushes full; 128 is fine on v5e.
    if hidden <= 2048:
        return hidden
    for cand in (512, 1024, 256, 2048, 128):
        if hidden % cand == 0:
            return cand
    return hidden


def _vmem_limit_bytes(tile_rows, hidden, tn, x_itemsize, num_col_tiles):
    x_blk = tile_rows * hidden * x_itemsize
    out_blk = tile_rows * tn * x_itemsize
    w_blk = hidden * tn * 2          # bf16
    b_blk = tn * 4
    if num_col_tiles == 1:
        # x/out double-buffered; weight & bias single-buffered (Buffered(1)).
        need = 2 * (x_blk + out_blk) + w_blk + b_blk
    else:
        x_col = tile_rows * tn * x_itemsize
        ln = tile_rows * hidden * 2  # bf16 scratch
        need = 2 * (x_blk + x_col + out_blk + w_blk + b_blk) + ln
    need += 8 * 1024 * 1024          # headroom for compiler scratch / spills
    # Cap below v7x's 64 MiB per-TC VMEM. v5e/v6e (128 MiB) may raise the cap
    # for resident-weight + very large row tile configurations.
    return int(min(max(need, 16 * 1024 * 1024), 56 * 1024 * 1024))


# --------------------------------------------------------------------------
# Wrapper
# --------------------------------------------------------------------------
def sublayer_connection(x, w_folded_bf16, b_fused_f32, *,
                        tile_rows=None, tn=None, vmem_limit_bytes=None):
    """out = x + Linear(LayerNorm(x)); x is (rows, hidden), rows = batch*seq.

    `w_folded_bf16` / `b_fused_f32` come from prepare_sublayer_params().
    """
    rows, hidden = x.shape
    itemsize = x.dtype.itemsize

    if tile_rows is None:
        tile_rows = _auto_tile_rows(rows, hidden, itemsize)
    if tn is None:
        tn = _choose_tn(hidden)

    num_row = pl.cdiv(rows, tile_rows)
    num_col = pl.cdiv(hidden, tn)
    if vmem_limit_bytes is None:
        vmem_limit_bytes = _vmem_limit_bytes(tile_rows, hidden, tn,
                                             itemsize, num_col)

    b_fused = b_fused_f32.astype(jnp.float32).reshape(1, hidden)

    if num_col == 1:
        # Small/medium H: weight fully resident, single-buffered.
        grid_spec = pltpu.PrefetchScalarGridSpec(
            num_scalar_prefetch=0,
            grid=(num_row,),
            in_specs=[
                pl.BlockSpec((tile_rows, hidden), lambda i: (i, 0)),
                pl.BlockSpec((hidden, hidden), lambda i: (0, 0),
                             pipeline_mode=pl.Buffered(1)),
                pl.BlockSpec((1, hidden), lambda i: (0, 0),
                             pipeline_mode=pl.Buffered(1)),
            ],
            out_specs=pl.BlockSpec((tile_rows, hidden), lambda i: (i, 0)),
        )
        return pl.pallas_call(
            _kernel_fused,
            out_shape=jax.ShapeDtypeStruct((rows, hidden), x.dtype),
            grid_spec=grid_spec,
            compiler_params=pltpu.CompilerParams(
                dimension_semantics=("parallel",),
                vmem_limit_bytes=vmem_limit_bytes),
        )(x, w_folded_bf16, b_fused)

    # Large H: column-split grid; LN cached in VMEM scratch at j == 0.
    assert hidden % tn == 0, "column tile must divide hidden"
    grid_spec = pltpu.PrefetchScalarGridSpec(
        num_scalar_prefetch=0,
        grid=(num_row, num_col),
        in_specs=[
            # Full-row x (for LN): block index constant across j -> one DMA
            # per row tile.
            pl.BlockSpec((tile_rows, hidden), lambda i, j: (i, 0)),
            # Column view of x (for the residual add) — avoids a dynamic lane
            # slice; extra read is cheap in the compute-bound large-H regime.
            pl.BlockSpec((tile_rows, tn), lambda i, j: (i, j)),
            pl.BlockSpec((hidden, tn), lambda i, j: (0, j)),
            pl.BlockSpec((1, tn), lambda i, j: (0, j)),
        ],
        out_specs=pl.BlockSpec((tile_rows, tn), lambda i, j: (i, j)),
        scratch_shapes=[pltpu.VMEM((tile_rows, hidden), jnp.bfloat16)],
    )
    return pl.pallas_call(
        _kernel_colsplit,
        out_shape=jax.ShapeDtypeStruct((rows, hidden), x.dtype),
        grid_spec=grid_spec,
        compiler_params=pltpu.CompilerParams(
            dimension_semantics=("parallel", "arbitrary"),
            vmem_limit_bytes=vmem_limit_bytes),
    )(x, x, w_folded_bf16, b_fused)


# --------------------------------------------------------------------------
# Pure-JAX reference (f32 everywhere)
# --------------------------------------------------------------------------
def reference(x, gamma, beta, w, b):
    xf = x.astype(jnp.float32)
    mean = jnp.mean(xf, axis=-1, keepdims=True)
    var = jnp.mean((xf - mean) ** 2, axis=-1, keepdims=True)
    normed = ((xf - mean) * jax.lax.rsqrt(var + EPS) * gamma[None, :]
              + beta[None, :])
    y = normed @ w.astype(jnp.float32) + b[None, :]
    return (xf + y).astype(x.dtype)


if __name__ == "__main__":
    key = jax.random.PRNGKey(0)
    kg, kbe, kw, kb, kx1, kx2, kx3, kw2, kb2 = jax.random.split(key, 9)

    # ---- Test 1: f32 activations, H=128, small rows, single row tile -------
    hidden = 128
    gamma = 1.0 + 0.1 * jax.random.normal(kg, (hidden,), dtype=jnp.float32)
    beta = 0.1 * jax.random.normal(kbe, (hidden,), dtype=jnp.float32)
    w = 0.02 * jax.random.normal(kw, (hidden, hidden), dtype=jnp.float32)
    b = 0.02 * jax.random.normal(kb, (hidden,), dtype=jnp.float32)
    w_folded, b_fused = prepare_sublayer_params(gamma, beta, w, b)

    batch, seq = 2, 8
    x1 = jax.random.normal(kx1, (batch * seq, hidden), dtype=jnp.float32)
    out1 = jax.block_until_ready(sublayer_connection(x1, w_folded, b_fused))
    ref1 = reference(x1, gamma, beta, w, b)
    assert out1.shape == x1.shape and out1.dtype == x1.dtype
    assert jnp.allclose(out1, ref1, atol=2e-2, rtol=2e-2), "mismatch (test 1)"

    # ---- Test 2: bf16 activations, ragged rows (300), grid > 1, no pad -----
    x2 = jax.random.normal(kx2, (300, hidden),
                           dtype=jnp.float32).astype(jnp.bfloat16)
    out2 = jax.block_until_ready(
        sublayer_connection(x2, w_folded, b_fused, tile_rows=128))
    ref2 = reference(x2, gamma, beta, w, b)
    assert out2.shape == x2.shape and out2.dtype == jnp.bfloat16
    assert jnp.allclose(out2.astype(jnp.float32), ref2.astype(jnp.float32),
                        atol=6e-2, rtol=6e-2), "mismatch (test 2)"

    # ---- Test 3: forced column-split path (large-H code path), 2x2 grid ----
    hidden3 = 256
    gamma3 = 1.0 + 0.1 * jax.random.normal(kg, (hidden3,), dtype=jnp.float32)
    beta3 = 0.1 * jax.random.normal(kbe, (hidden3,), dtype=jnp.float32)
    w3 = 0.02 * jax.random.normal(kw2, (hidden3, hidden3), dtype=jnp.float32)
    b3 = 0.02 * jax.random.normal(kb2, (hidden3,), dtype=jnp.float32)
    wf3, bf3 = prepare_sublayer_params(gamma3, beta3, w3, b3)
    x3 = jax.random.normal(kx3, (512, hidden3), dtype=jnp.float32)
    out3 = jax.block_until_ready(
        sublayer_connection(x3, wf3, bf3, tile_rows=256, tn=128))
    ref3 = reference(x3, gamma3, beta3, w3, b3)
    assert out3.shape == x3.shape
    assert jnp.allclose(out3, ref3, atol=2e-2, rtol=2e-2), "mismatch (test 3)"

    print("KERNEL_OK")
</pallas_src>

<mosaic_0001>
module attributes {stable_mosaic.version = 11 : i64} {
  func.func @_kernel_fused(%arg0: i32, %arg1: memref<16x128xf32, #tpu.memory_space<vmem>>, %arg2: memref<128x128xbf16, #tpu.memory_space<vmem>>, %arg3: memref<1x128xf32, #tpu.memory_space<vmem>>, %arg4: memref<16x128xf32, #tpu.memory_space<vmem>>) attributes {dimension_semantics = [#tpu.dimension_semantics<parallel>], iteration_bounds = array<i64: 1>, scalar_prefetch = 0 : i64, scratch_operands = 0 : i64, tpu.core_type = #tpu.core_type<tc>, window_params = [{transform_indices = @transform_0, window_bounds = array<i64: 16, 128>}, {pipeline_mode = #tpu.pipeline_mode<synchronous>, transform_indices = @transform_1, window_bounds = array<i64: 128, 128>}, {pipeline_mode = #tpu.pipeline_mode<synchronous>, transform_indices = @transform_2, window_bounds = array<i64: 1, 128>}, {transform_indices = @transform_3, window_bounds = array<i64: 16, 128>}]} {
    %c0 = arith.constant 0 : index
    %c0_0 = arith.constant 0 : index
    %0 = vector.load %arg1[%c0, %c0_0] : memref<16x128xf32, #tpu.memory_space<vmem>>, vector<16x128xf32>
    %cst = arith.constant dense<0.000000e+00> : vector<16xf32>
    %1 = vector.multi_reduction <add>, %0, %cst [1] : vector<16x128xf32> to vector<16xf32>
    %2 = vector.shape_cast %1 : vector<16xf32> to vector<16x1xf32>
    %cst_1 = arith.constant 1.280000e+02 : f32
    %3 = vector.broadcast %cst_1 : f32 to vector<16x1xf32>
    %4 = arith.divf %2, %3 : vector<16x1xf32>
    %5 = vector.broadcast %4 : vector<16x1xf32> to vector<16x128xf32>
    %6 = arith.subf %0, %5 : vector<16x128xf32>
    %7 = arith.mulf %6, %6 : vector<16x128xf32>
    %cst_2 = arith.constant dense<0.000000e+00> : vector<16xf32>
    %8 = vector.multi_reduction <add>, %7, %cst_2 [1] : vector<16x128xf32> to vector<16xf32>
    %9 = vector.shape_cast %8 : vector<16xf32> to vector<16x1xf32>
    %cst_3 = arith.constant 1.280000e+02 : f32
    %10 = vector.broadcast %cst_3 : f32 to vector<16x1xf32>
    %11 = arith.divf %9, %10 : vector<16x1xf32>
    %cst_4 = arith.constant 9.99999997E-7 : f32
    %12 = vector.broadcast %cst_4 : f32 to vector<16x1xf32>
    %13 = arith.addf %11, %12 : vector<16x1xf32>
    %14 = math.rsqrt %13 : vector<16x1xf32>
    %15 = vector.broadcast %14 : vector<16x1xf32> to vector<16x128xf32>
    %16 = arith.mulf %6, %15 : vector<16x128xf32>
    %17 = arith.truncf %16 : vector<16x128xf32> to vector<16x128xbf16>
    %c0_5 = arith.constant 0 : index
    %c0_6 = arith.constant 0 : index
    %18 = vector.load %arg2[%c0_5, %c0_6] : memref<128x128xbf16, #tpu.memory_space<vmem>>, vector<128x128xbf16>
    %cst_7 = arith.constant dense<0.000000e+00> : vector<16x128xf32>
    %19 = tpu.matmul %17, %18, %cst_7 {dimension_numbers = #tpu.dot_dimension_numbers<[1], [0], [0], [1], [0, 0, 1, 1], [], []>} : vector<16x128xbf16>, vector<128x128xbf16>, vector<16x128xf32> -> vector<16x128xf32>
    %c0_8 = arith.constant 0 : index
    %c0_9 = arith.constant 0 : index
    %20 = vector.load %arg3[%c0_8, %c0_9] : memref<1x128xf32, #tpu.memory_space<vmem>>, vector<1x128xf32>
    %21 = vector.broadcast %20 : vector<1x128xf32> to vector<16x128xf32>
    %22 = arith.addf %19, %21 : vector<16x128xf32>
    %c0_10 = arith.constant 0 : index
    %c0_11 = arith.constant 0 : index
    %23 = vector.load %arg1[%c0_10, %c0_11] : memref<16x128xf32, #tpu.memory_space<vmem>>, vector<16x128xf32>
    %24 = arith.addf %23, %22 : vector<16x128xf32>
    %c0_12 = arith.constant 0 : index
    %c0_13 = arith.constant 0 : index
    %25 = vector.load %arg4[%c0_12, %c0_13] : memref<16x128xf32, #tpu.memory_space<vmem>>, vector<16x128xf32>
    tpu.vector_store %arg4[%c0_12, %c0_13], %24 {strides = array<i32>} : memref<16x128xf32, #tpu.memory_space<vmem>>, vector<16x128xf32>,
    return
  }
  func.func @transform_0(%arg0: i32) -> (i32, i32) {
    %c0_i32 = arith.constant 0 : i32
    %c0_i32_0 = arith.constant 0 : i32
    return %arg0, %c0_i32 : i32, i32
  }
  func.func @transform_1(%arg0: i32) -> (i32, i32) {
    %c0_i32 = arith.constant 0 : i32
    %c0_i32_0 = arith.constant 0 : i32
    %c0_i32_1 = arith.constant 0 : i32
    return %c0_i32, %c0_i32_0 : i32, i32
  }
  func.func @transform_2(%arg0: i32) -> (i32, i32) {
    %c0_i32 = arith.constant 0 : i32
    %c0_i32_0 = arith.constant 0 : i32
    %c0_i32_1 = arith.constant 0 : i32
    return %c0_i32, %c0_i32_0 : i32, i32
  }
  func.func @transform_3(%arg0: i32) -> (i32, i32) {
    %c0_i32 = arith.constant 0 : i32
    %c0_i32_0 = arith.constant 0 : i32
    return %arg0, %c0_i32 : i32, i32
  }
}

</mosaic_0001>

<bundles_post_ra>
// kernel: tpu_custom_call.1
= control target key start
LH: loop header
LB: loop body
LE: loop exit
PB: predicated region body
PF: predicated region fallthrough
CT: control target
= control target key end

     0   :  { %8 = vsyncpa [#allocation3], 0  ;;  %s414_s0 = inlined_call_operand.hbm [shape: f32[16,128], index: 0, kind: input, shape index: {}]   ;;  %s415_s1 = inlined_call_operand.hbm [shape: bf16[128,128], index: 1, kind: input, shape index: {}]   ;;  %s416_s2 = inlined_call_operand.vmem [shape: f32[1,128], index: 2, kind: input, shape index: {}]   ;;  %s417_s3 = inlined_call_operand.hbm [shape: f32[16,128], index: 3, kind: output, shape index: {}]  }
   0x1   :  { %9 = vsyncpa [#allocation6], 0 }
   0x2   :  { %10 = vsyncpa [#allocation4], 0  ;;  %s335_s12 = smov [#allocation2]   ;;  %s263_s16 = scalar_lea.hbm %s414_s0, 256 }
   0x3   :  { %s16_s13 = sshll.u32 %s335_s12, 4  ;;  %p264_p0 = scmp.ne.s32.totalorder %s414_s0, %s263_s16  ;;  %s17_s13 = int_to_ptr.vmem [resolvable:$true] %s16_s13 }
   0x4   :  { %p267_p1 = scmp.lt.u32.totalorder %s263_s16, %s414_s0 }
   0x6   :  { %p269_p2 = pnand %p267_p1, %p264_p0 }
   0x8   :  { %272 = shalt.err (!%p269_p2)
}
   0x9   :  { %s273_s21 = scalar_lea.vmem %s17_s13, 256  ;;  %p278_p4 = scmp.lt.s32.totalorder %s17_s13, %s17_s13 }
   0xa   :  { %p274_p3 = scmp.ne.s32.totalorder %s17_s13, %s273_s21  ;;  %p279_p5 = scmp.lt.s32.totalorder %s273_s21, %s273_s21 }
   0xc   :  { %p280_p6 = por %p279_p5, %p278_p4 }
   0xe   :  { %p281_p7 = pnand %p280_p6, %p274_p3 }
  0x10   :  { %284 = shalt.err (!%p281_p7)
}
  0x11   :  { %s336_s22 = smov 128   ;;  %s337_s23 = smov 8  }
  0x12   :  { %22 = dma.hbm_to_vmem [thread:$0]  %s414_s0, 256, %s17_s13, [#allocation3], %s336_s22, %s336_s22, %s337_s23  }
  0x13   :  { %s338_s26 = smov [#allocation5]   ;;  %s285_s30 = scalar_lea.hbm %s415_s1, 1024 }
  0x14   :  { %s28_s27 = sshll.u32 %s338_s26, 4  ;;  %p286_p8 = scmp.ne.s32.totalorder %s415_s1, %s285_s30  ;;  %s29_s27 = int_to_ptr.vmem [resolvable:$true] %s28_s27 }
  0x15   :  { %p289_p9 = scmp.lt.u32.totalorder %s285_s30, %s415_s1 }
  0x17   :  { %p291_p10 = pnand %p289_p9, %p286_p8 }
  0x19   :  { %294 = shalt.err (!%p291_p10)
}
  0x1a   :  { %s295_s8 = scalar_lea.vmem %s29_s27, 1024  ;;  %p300_p12 = scmp.lt.s32.totalorder %s29_s27, %s29_s27 }
  0x1b   :  { %p296_p11 = scmp.ne.s32.totalorder %s29_s27, %s295_s8  ;;  %p301_p13 = scmp.lt.s32.totalorder %s295_s8, %s295_s8 }
  0x1d   :  { %p302_p0 = por %p301_p13, %p300_p12 }
  0x1f   :  { %p303_p1 = pnand %p302_p0, %p296_p11 }
  0x21   :  { %306 = shalt.err (!%p303_p1)
}
  0x22   :  { %s339_s0 = smov 64   ;;  %s340_s9 = smov 4  }
  0x23   :  { %34 = dma.hbm_to_vmem [thread:$0]  %s415_s1, 1024, %s29_s27, [#allocation6], %s339_s0, %s339_s0, %s340_s9  }
  0x24   :  { %329 = dma.done.wait [#allocation3], 256  }
  0x25   :  { %330 = vsyncadd [#allocation3], 4294967040 }
  0x26   :  { %331 = dma.done.wait [#allocation6], 1024  }
  0x27   :  { %332 = vsyncadd [#allocation6], 4294966272  ;;  %v44_v0 = vld [vmem:[#allocation2] sm:$0xff]  ;;  %v391_v1 = vld [vmem:[#allocation2 + $0x8] sm:$0xff]  ;;  %v341_v3 = vmov 0.0   ;;  %vm342_vm0 = vmmov 0  }
  0x28   :  { %46 = vadd.xlane.f32.xlu0 %v44_v0  ;;  %v251_v2 = vld [vmem:[#allocation5] sm:$0xff]   ;;  %222 = vmatprep.subr.bf16.mxu0 %v341_v3  ;;  %v252_v4 = vld [vmem:[#allocation5 + $0x8] sm:$0xff]   ;;  %v253_v13 = vld [vmem:[#allocation5 + $0x10] sm:$0xff]   ;;  %s343_s13 = smov [#allocation7]  }
  0x29   :  { %223 = vmatpush3.bf16.msra.mxu0 %v251_v2  ;;  %v254_v14 = vld [vmem:[#allocation5 + $0x18] sm:$0xff]   ;;  %v255_v15 = vld [vmem:[#allocation5 + $0x20] sm:$0xff]   ;;  %v256_v16 = vld [vmem:[#allocation5 + $0x28] sm:$0xff]   ;;  %238 = vmatprep.mubr.msk.bf16.mxu0 %vm342_vm0, %v341_v3  ;;  %s191_s14 = sshll.u32 %s343_s13, 4  ;;  %s192_s14 = int_to_ptr.vmem [resolvable:$true] %s191_s14 }
  0x2a   :  { %224 = vmatprep.subr.bf16.mxu0 %v341_v3  ;;  %v257_v17 = vld [vmem:[#allocation5 + $0x30] sm:$0xff]   ;;  %v258_v18 = vld [vmem:[#allocation5 + $0x38] sm:$0xff]   ;;  %s307_s15 = scalar_lea.vmem %s192_s14, 256  ;;  %p312_p3 = scmp.lt.s32.totalorder %s192_s14, %s192_s14 }
  0x2b   :  { %v204_v30 = vld [vmem:[%s416_s2] ss:$0 sm:$0xff]  ;;  %p308_p2 = scmp.ne.s32.totalorder %s192_s14, %s307_s15  ;;  %p313_p4 = scmp.lt.s32.totalorder %s307_s15, %s307_s15 }
  0x2c   :  { %48 = vadd.xlane.f32.xlu0 %v391_v1 }
  0x2d   :  { %225 = vmatpush3.bf16.msra.mxu0 %v252_v4  ;;  %p314_p5 = por %p313_p4, %p312_p3 }
  0x2e   :  { %226 = vmatprep.subr.bf16.mxu0 %v341_v3 }
  0x2f   :  { %p315_p6 = pnand %p314_p5, %p308_p2 }
  0x31   :  { %227 = vmatpush3.bf16.msra.mxu0 %v253_v13 }
  0x32   :  { %228 = vmatprep.subr.bf16.mxu0 %v341_v3 }
  0x35   :  { %229 = vmatpush3.bf16.msra.mxu0 %v254_v14 }
  0x36   :  { %230 = vmatprep.subr.bf16.mxu0 %v341_v3 }
  0x39   :  { %231 = vmatpush3.bf16.msra.mxu0 %v255_v15 }
  0x3a   :  { %232 = vmatprep.subr.bf16.mxu0 %v341_v3 }
  0x3d   :  { %233 = vmatpush3.bf16.msra.mxu0 %v256_v16 }
  0x3e   :  { %234 = vmatprep.subr.bf16.mxu0 %v341_v3 }
  0x41   :  { %235 = vmatpush3.bf16.msra.mxu0 %v257_v17 }
  0x42   :  { %236 = vmatprep.subr.bf16.mxu0 %v341_v3 }
  0x45   :  { %237 = vmatpush3.bf16.msra.mxu0 %v258_v18 }
  0xb5   :  { %v47_v5 = vpop.xlane.xlu0 %46 }
  0xb6   :  { %v51_v6 = vmul.f32 0.0078125, %v47_v5 }
  0xb8   :  { %v53_v7 = vsub.f32 %v44_v0, %v51_v6 }
  0xb9   :  { %v49_v8 = vpop.xlane.xlu0 %48 }
  0xba   :  { %v52_v9 = vmul.f32 0.0078125, %v49_v8  ;;  %v55_v10 = vmul.f32 %v53_v7, %v53_v7 }
  0xbc   :  { %v54_v11 = vsub.f32 %v391_v1, %v52_v9  ;;  %57 = vadd.xlane.f32.xlu1 %v55_v10 }
  0xbe   :  { %v56_v12 = vmul.f32 %v54_v11, %v54_v11 }
  0xc0   :  { %59 = vadd.xlane.f32.xlu1 %v56_v12 }
 0x149   :  { %v58_v19 = vpop.xlane.xlu1 %57 }
 0x14a   :  { %v61_v20 = vmul.f32 0.0078125, %v58_v19 }
 0x14c   :  { %v63_v21 = vadd.f32 1e-06, %v61_v20 }
 0x14d   :  { %v60_v22 = vpop.xlane.xlu1 %59 }
 0x14e   :  { %v62_v23 = vmul.f32 0.0078125, %v60_v22  ;;  %259 = vrsqrt.f32 %v63_v21 }
 0x150   :  { %v64_v24 = vadd.f32 1e-06, %v62_v23 }
 0x152   :  { %261 = vrsqrt.f32 %v64_v24 }
 0x158   :  { %v260_v25 = vpop.eup %259 }
 0x159   :  { %v67_v27 = vmul.f32 %v260_v25, %v53_v7 }
 0x15c   :  { %v262_v26 = vpop.eup %261 }
 0x15d   :  { %v68_v28 = vmul.f32 %v262_v26, %v54_v11 }
 0x15f   :  { %v69_v29 = vpack.c.bf16 %v68_v28, %v67_v27 }
 0x161   :  { %239 = vmatmul.mubr.bf16.vlgmr.msra.gmra.mrb[0].mxu0 %v69_v29 }
 0x234   :  { %v175_v31 = vpop.f32.mrb[0].mxu0 }
 0x235   :  { %v176_v32 = vadd.f32 %v204_v30, %v175_v31  ;;  %v240_v33 = vpop.f32.mrb[1].mxu0 }
 0x236   :  { %v178_v34 = vpop.f32.mrb[2].mxu0 }
 0x237   :  { %v182_v35 = vadd.f32 %v176_v32, %v44_v0  ;;  %v179_v36 = vadd.f32 %v204_v30, %v178_v34  ;;  %v241_v37 = vpop.f32.mrb[3].mxu0 }
 0x239   :  { %184 = vst [vmem:[#allocation7] sm:$0xff] %v182_v35  ;;  %v183_v38 = vadd.f32 %v179_v36, %v391_v1 }
 0x23b   :  { %185 = vst [vmem:[#allocation7 + $0x8] sm:$0xff] %v183_v38 }
 0x23c   :  { %318 = shalt.err (!%p315_p6)
}
 0x23d   :  { %s319_s17 = scalar_lea.hbm %s417_s3, 256 }
 0x23e   :  { %p320_p7 = scmp.ne.s32.totalorder %s417_s3, %s319_s17  ;;  %p323_p8 = scmp.lt.u32.totalorder %s319_s17, %s417_s3 }
 0x240   :  { %p325_p9 = pnand %p323_p8, %p320_p7 }
 0x242   :  { %328 = shalt.err (!%p325_p9)
}
 0x243   :  { %197 = dma.vmem_to_hbm [thread:$0]  %s192_s14, 256, %s417_s3, [#allocation4], %s336_s22, %s336_s22, %s337_s23  }
 0x244   :  { %333 = dma.done.wait [#allocation4], 256  }
 0x245   :  { %334 = vsyncadd [#allocation4], 4294967040 }
 0x246   :  { %201 = vsyncpa [#allocation3], 1 }
 0x247   :  { %202 = vsyncpa [#allocation6], 1 }
 0x248   :  { %203 = vsyncpa [#allocation4], 1 }

</bundles_post_ra>
